<compile_context>
chip_gen: v7x
topology: tpu7x:2x2x1
jax: 0.10.0
libtpu: 0.0.40
codegen_flags: <defaults>
</compile_context>

<pallas_src>
import jax
import jax.numpy as jnp
from jax.experimental import pallas as pl
from jax.experimental.pallas import tpu as pltpu


def _pixelwise_dot_kernel(x_ref, k_ref, o_ref):
    # x_ref: (C, T_HW), k_ref: (Cout, C), o_ref: (Cout, T_HW)
    # out_tile = K @ x_tile, accumulated in f32 on the MXU.
    o_ref[...] = jnp.dot(
        k_ref[...], x_ref[...], preferred_element_type=jnp.float32
    ).astype(o_ref.dtype)


def _default_tiling():
    """Return (max_hw_tile, vmem_limit_bytes) tuned per TPU generation."""
    try:
        kind = jax.devices()[0].device_kind.lower()
    except Exception:
        kind = ""
    if ("v5" in kind) or ("v6" in kind):
        # 128 MiB VMEM per TensorCore: big tiles + raised scoped-VMEM limit.
        return 16384, 96 * 1024 * 1024
    # v7x (64 MiB VMEM per TC) or unknown generation: conservative but large.
    return 8192, 48 * 1024 * 1024


def pixel_wise_dot_product(x, K, *, max_hw_tile=None, vmem_limit_bytes=None):
    """x: (N, C, H, W), K: (N, Cout, C) -> (N, Cout, H, W)."""
    n, c, h, w = x.shape
    kn, cout, ck = K.shape
    assert c == ck, (
        "Number of channels in x and Embedding dimension (at dim 2) of K "
        "matrix must match"
    )
    assert kn == n, "Batch dims of x and K must match"

    hw = h * w
    x_flat = x.reshape(n, c, hw)

    # Degenerate channel counts waste >95% of vreg/MXU capacity; XLA's stock
    # einsum is faster there.
    if c < 8 or cout < 8:
        y = jnp.einsum("ncp,noc->nop", x_flat, K).astype(x.dtype)
        return y.reshape(n, cout, h, w)

    default_tile, default_vmem = _default_tiling()
    if max_hw_tile is None:
        max_hw_tile = default_tile
    if vmem_limit_bytes is None:
        vmem_limit_bytes = default_vmem

    # Spatial tile: full HW if it fits in one tile, else a lane-aligned
    # (multiple-of-128) tile; any ragged last block is masked by Pallas on
    # store (safe because the reduction axis is C, not HW).
    t_hw = hw if hw <= max_hw_tile else max_hw_tile
    num_hw_tiles = pl.cdiv(hw, t_hw)

    x_bytes = jnp.dtype(x.dtype).itemsize
    k_bytes = jnp.dtype(K.dtype).itemsize
    cost = pl.CostEstimate(
        flops=2 * n * cout * c * hw,
        transcendentals=0,
        bytes_accessed=(
            x_bytes * n * c * hw        # x in
            + k_bytes * n * cout * c    # K in
            + x_bytes * n * cout * hw   # out
        ),
    )

    out = pl.pallas_call(
        _pixelwise_dot_kernel,
        out_shape=jax.ShapeDtypeStruct((n, cout, hw), x.dtype),
        grid_spec=pltpu.PrefetchScalarGridSpec(
            num_scalar_prefetch=0,
            # Batch outer, HW tiles inner: K block index constant across the
            # inner axis -> K stays resident in VMEM.
            grid=(n, num_hw_tiles),
            in_specs=[
                # x: (C, T_HW) tile per (batch, hw_tile); batch dim squeezed.
                pl.BlockSpec((None, c, t_hw), lambda b, t: (b, 0, t)),
                # K: (Cout, C) whole per-batch matrix; invariant over HW tiles.
                pl.BlockSpec((None, cout, c), lambda b, t: (b, 0, 0)),
            ],
            out_specs=pl.BlockSpec((None, cout, t_hw), lambda b, t: (b, 0, t)),
        ),
        compiler_params=pltpu.CompilerParams(
            dimension_semantics=("parallel", "parallel"),
            vmem_limit_bytes=vmem_limit_bytes,
        ),
        cost_estimate=cost,
    )(x_flat, K)

    return out.reshape(n, cout, h, w)


if __name__ == "__main__":
    key = jax.random.PRNGKey(0)
    k1, k2, k3, k4 = jax.random.split(key, 4)

    def ref(x, K):
        n, c, h, w = x.shape
        cout = K.shape[1]
        return jnp.einsum("ncp,noc->nop", x.reshape(n, c, h * w), K).reshape(
            n, cout, h, w
        )

    # 1) Main Pallas path; a small forced tile (128) with hw = 16*17 = 272
    #    exercises multi-step pipelining and the masked ragged last HW block.
    n, c, h, w, cout = 2, 32, 16, 17, 16
    x = jax.random.normal(k1, (n, c, h, w), dtype=jnp.float32)
    K = jax.random.normal(k2, (n, cout, c), dtype=jnp.float32)
    y = pixel_wise_dot_product(x, K, max_hw_tile=128)
    jax.block_until_ready(y)
    assert y.shape == (n, cout, h, w)
    assert jnp.allclose(y, ref(x, K), atol=1e-5, rtol=1e-5)

    # 2) Same inputs through the default (single-tile, generation-tuned) config.
    y2 = pixel_wise_dot_product(x, K)
    jax.block_until_ready(y2)
    assert jnp.allclose(y2, ref(x, K), atol=1e-5, rtol=1e-5)

    # 3) Degenerate-channel fallback path (original tiny demo shapes).
    n, c, h, w, cout = 2, 4, 16, 16, 8
    x_s = jax.random.normal(k3, (n, c, h, w), dtype=jnp.float32)
    K_s = jax.random.normal(k4, (n, cout, c), dtype=jnp.float32)
    y3 = pixel_wise_dot_product(x_s, K_s)
    jax.block_until_ready(y3)
    assert y3.shape == (n, cout, h, w)
    assert jnp.allclose(y3, ref(x_s, K_s), atol=1e-5, rtol=1e-5)

    print("KERNEL_OK")
</pallas_src>

<mosaic_0001>
module attributes {stable_mosaic.version = 11 : i64} {
  func.func @_pixelwise_dot_kernel(%arg0: i32, %arg1: i32, %arg2: memref<1x32x128xf32, #tpu.memory_space<vmem>>, %arg3: memref<1x16x32xf32, #tpu.memory_space<vmem>>, %arg4: memref<1x16x128xf32, #tpu.memory_space<vmem>>) attributes {dimension_semantics = [#tpu.dimension_semantics<parallel>, #tpu.dimension_semantics<parallel>], iteration_bounds = array<i64: 2, 3>, scalar_prefetch = 0 : i64, scratch_operands = 0 : i64, tpu.core_type = #tpu.core_type<tc>, window_params = [{transform_indices = @transform_0, window_bounds = array<i64: 1, 32, 128>}, {transform_indices = @transform_1, window_bounds = array<i64: 1, 16, 32>}, {transform_indices = @transform_2, window_bounds = array<i64: 1, 16, 128>}]} {
    %c0 = arith.constant 0 : index
    %c0_0 = arith.constant 0 : index
    %c0_1 = arith.constant 0 : index
    %0 = vector.load %arg3[%c0, %c0_0, %c0_1] : memref<1x16x32xf32, #tpu.memory_space<vmem>>, vector<1x16x32xf32>
    %1 = vector.shape_cast %0 : vector<1x16x32xf32> to vector<16x32xf32>
    %c0_2 = arith.constant 0 : index
    %c0_3 = arith.constant 0 : index
    %c0_4 = arith.constant 0 : index
    %2 = vector.load %arg2[%c0_2, %c0_3, %c0_4] : memref<1x32x128xf32, #tpu.memory_space<vmem>>, vector<1x32x128xf32>
    %3 = vector.shape_cast %2 : vector<1x32x128xf32> to vector<32x128xf32>
    %cst = arith.constant dense<0.000000e+00> : vector<16x128xf32>
    %4 = tpu.matmul %1, %3, %cst {dimension_numbers = #tpu.dot_dimension_numbers<[1], [0], [0], [1], [0, 0, 1, 1], [], []>} : vector<16x32xf32>, vector<32x128xf32>, vector<16x128xf32> -> vector<16x128xf32>
    %c0_5 = arith.constant 0 : index
    %c0_6 = arith.constant 0 : index
    %c0_7 = arith.constant 0 : index
    %5 = vector.load %arg4[%c0_5, %c0_6, %c0_7] : memref<1x16x128xf32, #tpu.memory_space<vmem>>, vector<1x16x128xf32>
    %6 = vector.shape_cast %5 : vector<1x16x128xf32> to vector<16x128xf32>
    %7 = vector.shape_cast %4 : vector<16x128xf32> to vector<1x16x128xf32>
    tpu.vector_store %arg4[%c0_5, %c0_6, %c0_7], %7 {strides = array<i32>} : memref<1x16x128xf32, #tpu.memory_space<vmem>>, vector<1x16x128xf32>,
    return
  }
  func.func @transform_0(%arg0: i32, %arg1: i32) -> (i32, i32, i32) {
    %c0_i32 = arith.constant 0 : i32
    %c0_i32_0 = arith.constant 0 : i32
    return %arg0, %c0_i32, %arg1 : i32, i32, i32
  }
  func.func @transform_1(%arg0: i32, %arg1: i32) -> (i32, i32, i32) {
    %c0_i32 = arith.constant 0 : i32
    %c0_i32_0 = arith.constant 0 : i32
    %c0_i32_1 = arith.constant 0 : i32
    return %arg0, %c0_i32, %c0_i32_0 : i32, i32, i32
  }
  func.func @transform_2(%arg0: i32, %arg1: i32) -> (i32, i32, i32) {
    %c0_i32 = arith.constant 0 : i32
    %c0_i32_0 = arith.constant 0 : i32
    return %arg0, %c0_i32, %arg1 : i32, i32, i32
  }
}

</mosaic_0001>

<bundles_post_ra>
// kernel: tpu_custom_call.1
= control target key start
LH: loop header
LB: loop body
LE: loop exit
PB: predicated region body
PF: predicated region fallthrough
CT: control target
= control target key end

     0   :  { %7 = vsyncpa [#allocation3], 0  ;;  %s1122_s0 = inlined_call_operand.hbm [shape: f32[2,32,272], index: 0, kind: input, shape index: {}]   ;;  %s1123_s1 = inlined_call_operand.hbm [shape: f32[2,16,32], index: 1, kind: input, shape index: {}]   ;;  %s1124_s2 = inlined_call_operand.hbm [shape: f32[2,16,272], index: 2, kind: output, shape index: {}]  }
   0x1   :  { %9 = vsyncpa [#allocation3 + $0x1], 0 }
   0x2   :  { %10 = vsyncpa [#allocation6], 0 }
   0x3   :  { %12 = vsyncpa [#allocation6 + $0x1], 0 }
   0x4   :  { %13 = vsyncpa [#allocation4], 0 }
   0x5   :  { %15 = vsyncpa [#allocation4 + $0x1], 0  ;;  %s807_s9 = smov 0   ;;  %s809_s10 = smov 0  }
   0x6   :  { %s811_s11 = smov 0   ;;  %s813_s12 = smov 0  }
   0x7   :  { %s815_s13 = smov 0   ;;  %s817_s14 = smov 0  }
   0x8   :  { %s819_s15 = smov 0   ;;  %s821_s16 = smov 0  }
   0x9   :  { %s823_s17 = smov 0   ;;  %s825_s18 = smov 0  }
   0xa   :  { %s827_s19 = smov 0  }
   0xb LB: > { %s1125_s20 = sadd.s32 4294967295, %s781_s19   ;;  %s436_s21 = sadd.s32 4294967294, %s781_s19   ;;  %s781_s19 = sphi %s827_s19, %s21_s19   ;;  %s777_s18 = sphi %s825_s18, %s1170_s18   ;;  %s773_s17 = sphi %s823_s17, %s1169_s17   ;;  %s769_s16 = sphi %s821_s16, %s1168_s16   ;;  %s765_s15 = sphi %s819_s15, %s1167_s15   ;;  %s761_s14 = sphi %s817_s14, %s1166_s14   ;;  %s757_s13 = sphi %s815_s13, %s1165_s13   ;;  %s753_s12 = sphi %s813_s12, %s1164_s12   ;;  %s749_s11 = sphi %s811_s11, %s1163_s11   ;;  %s745_s10 = sphi %s809_s10, %s1162_s10   ;;  %s741_s9 = sphi %s807_s9, %s1161_s9  }
   0xc   : > { %s30_s22 = sadd.s32 1, %s773_s17  ;;  %s33_s23 = sadd.s32 1, %s777_s18 }
   0xd   : > { %p31_p0 = scmp.ge.s32.totalorder %s30_s22, 3  ;;  %s42_s24 = sadd.s32 1, %s761_s14 }
   0xe   : > { %p49_p1 = scmp.ne.s32.totalorder %s761_s14, %s757_s13  ;;  %p1130_p2 = scmp.eq.s32.totalorder %s781_s19, 0 }
   0xf   : > { %s1172_s22 = smov (%p31_p0, %s30_s22), 0  ;;  %s1174_s23 = smov (!%p31_p0, %s33_s23), %s777_s18 }
  0x10   : > { %1136 = sst [smem:[#allocation11_spill]] %s1172_s22  ;;  %s38_s25 = ssub.s32 %s773_s17, %s1172_s22 }
  0x11   : > { %p877_p3 = por %p1130_p2, %p49_p1  ;;  %p35_p4 = scmp.ge.s32.totalorder %s1174_s23, 2 }
  0x12   : > { %p1131_p5 = scmp.ne.s32.totalorder %s757_s13, %s753_s12  ;;  %p107_p6 = scmp.eq.s32.totalorder %s1125_s20, 5 }
  0x13   : > { %p113_p7 = scmp.eq.s32.totalorder %s436_s21, 5  ;;  %s1176_s23 = smov (%p35_p4, %s1174_s23), 0 }
  0x14   : > { %1138 = sst [smem:[#allocation12_spill]] %s1176_s23  ;;  %p887_p8 = por %p107_p6, %p49_p1 }
  0x15   : > { %p894_p9 = por %p113_p7, %p1131_p5  ;;  %s900_s29 = ssub.s32 %s777_s18, %s1176_s23 }
  0x16   : > { %s1139_s27 = scalar_select %p887_p8, 1, 0 }
  0x17   : > { %s1140_s28 = scalar_select %p894_p9, 1, 0 }
  0x18   : > { %s39_s30 = sor.u32 %s38_s25, %s900_s29  ;;  %p1129_p12 = scmp.lt.s32.totalorder %s781_s19, 6 }
  0x19   : > { %1141 = sst [smem:[#allocation13_spill]] %s1140_s28  ;;  %p40_p11 = scmp.eq.s32.totalorder %s39_s30, 0 }
  0x1a   : > { %s133_s3 = sand.u32 1, %s761_s14   ;;  %s480_s4 = smul.u32 12, %s777_s18 }
  0x1b   : > { %s908_s5 = scalar_select %p40_p11, %s761_s14, %s42_s24  }
  0x1c   : > { %s439_s6 = sshll.u32 %s133_s3, 5  ;;  %s142_s7 = sadd.s32 %s773_s17, %s480_s4 }
  0x1d   : > { %s440_s8 = sshll.u32 %s142_s7, 7  ;;  %s137_s21 = scalar_lea.vmem [#allocation2], %s439_s6 }
  0x1e   : > { %s145_s20 = sshll.u32 %s137_s21, 4  ;;  %s914_s23 = scalar_lea.hbm %s1122_s0, %s440_s8  ;;  %s916_s20 = int_to_ptr.vmem [resolvable:$true] %s145_s20 }
  0x1f   : > { %p922_p13 = pnand %p1129_p12, %p877_p3  ;;  %s927_s25 = scalar_lea.sflag [#allocation3], %s133_s3 }
  0x20   : > { %s595_s22 = scalar_lea.hbm %s914_s23, 512  ;;  %s600_s30 = scalar_lea.hbm %s1122_s0, 3072 }
  0x21   : > { %p596_p1 = scmp.ne.s32.totalorder %s914_s23, %s595_s22  ;;  %p597_p4 = pneg %p922_p13 }
  0x22   : > { %p601_p3 = scmp.lt.u32.totalorder %s914_s23, %s1122_s0  ;;  %p602_p11 = scmp.lt.u32.totalorder %s600_s30, %s595_s22 }
  0x23   : > { %p598_p6 = pnand %p597_p4, %p596_p1  ;;  %p604_p2 = scmp.lt.u32.totalorder %s595_s22, %s914_s23 }
  0x24   : > { %p603_p12 = por %p602_p11, %p601_p3 }
  0x25   : > { %p599_p7 = pneg %p598_p6 }
  0x26   : > { %p605_p5 = por %p604_p2, %p603_p12 }
  0x28   : > { %p606_p10 = pnand %p605_p5, %p599_p7 }
  0x2a   : > { %609 = shalt.err (!%p606_p10)
}
  0x2b   : > { %s610_s3 = scalar_lea.vmem %s916_s20, 512  ;;  %s783_s7 = smov [#allocation2]  }
  0x2c   : > { %p611_p1 = scmp.ne.s32.totalorder %s916_s20, %s610_s3  ;;  %s615_s8 = sshll.u32 %s783_s7, 4  ;;  %s616_s8 = int_to_ptr.vmem [resolvable:$false] %s615_s8 }
  0x2d   : > { %s617_s21 = scalar_lea.vmem %s616_s8, 1024  ;;  %p618_p9 = scmp.lt.s32.totalorder %s916_s20, %s616_s8 }
  0x2e   : > { %p613_p6 = pnand %p611_p1, %p597_p4  ;;  %p619_p3 = scmp.lt.s32.totalorder %s617_s21, %s610_s3 }
  0x30   : > { %p614_p0 = pneg %p613_p6  ;;  %p620_p11 = por %p619_p3, %p618_p9 }
  0x32   : > { %p621_p2 = pnand %p620_p11, %p614_p0 }
  0x34   : > { %624 = shalt.err (!%p621_p2)
}
  0x35   : > { %s784_s22 = smov 384   ;;  %s1132_s28 = smov 128  }
  0x36   : > { %s786_s26 = smov 8   ;;  %p174_p5 = scmp.lt.s32.totalorder %s781_s19, 7 }
  0x37   : > { %491 = dma.hbm_to_vmem [thread:$0]  (!%p922_p13), %s914_s23, 512, %s916_s20, %s927_s25, %s784_s22, %s1132_s28, %s786_s26  }
  0x38   : > { %p1143_p9 = scmp.ge.s32.totalorder %s781_s19, 1  ;;  %s1145_s4 = sadd.s32 4294967295, %s781_s19  }
  0x39   : > { %p56_p12 = scmp.eq.s32.totalorder %s1145_s4, 0  ;;  %s68_s6 = sadd.s32 1, %s749_s11 }
  0x3a   : > { %p960_p10 = pnand %p1143_p9, %p174_p5  ;;  %p1146_p0 = scmp.eq.s32.totalorder %s900_s29, 0 }
  0x3b   : > { %p1147_p4 = scmp.ne.s32.totalorder %s757_s13, %s753_s12  ;;  %p75_p1 = scmp.ne.s32.totalorder %s749_s11, %s745_s10 }
  0x3c   : > { %s970_s3 = scalar_select %p1146_p0, %s749_s11, %s68_s6  }
  0x3d   : > { %p975_p7 = por %p56_p12, %p1147_p4  ;;  %p81_p13 = scmp.ne.s32.totalorder %s745_s10, %s741_s9 }
  0x3e   : > { %s155_s20 = sand.u32 1, %s749_s11   ;;  %p1149_p6 = scmp.eq.s32.totalorder %s781_s19, 0 }
  0x3f   : > { %s1148_s7 = scalar_select %p975_p7, 1, 0 }
  0x40   : > { %p77_p3 = por %p75_p1, %p1149_p6  ;;  %p986_p11 = por %p81_p13, %p56_p12 }
  0x41   : > { %s441_s24 = sshll.u32 %s155_s20, 4  ;;  %s454_s25 = sshll.u32 %s777_s18, 8 }
  0x42   : > { %s1150_s23 = scalar_select %p986_p11, 1, 0 }
  0x43   : > { %s994_s21 = scalar_lea.hbm %s1123_s1, %s454_s25  ;;  %s159_s22 = scalar_lea.vmem [#allocation5], %s441_s24 }
  0x44   : > { %s166_s9 = sshll.u32 %s159_s22, 4  ;;  %p1151_p2 = scmp.lt.s32.totalorder %s781_s19, 6  ;;  %s996_s9 = int_to_ptr.vmem [resolvable:$true] %s166_s9 }
  0x45   : > { %s1004_s6 = scalar_lea.sflag [#allocation6], %s155_s20  ;;  %s625_s8 = scalar_lea.hbm %s994_s21, 256 }
  0x46   : > { %p1000_p5 = pnand %p1151_p2, %p77_p3  ;;  %p626_p9 = scmp.ne.s32.totalorder %s994_s21, %s625_s8 }
  0x47   : > { %s630_s29 = scalar_lea.hbm %s1123_s1, 512  ;;  %p631_p1 = scmp.lt.u32.totalorder %s994_s21, %s1123_s1 }
  0x48   : > { %p627_p12 = pneg %p1000_p5  ;;  %p632_p13 = scmp.lt.u32.totalorder %s630_s29, %s625_s8 }
  0x49   : > { %p634_p3 = scmp.lt.u32.totalorder %s625_s8, %s994_s21 }
  0x4a   : > { %p628_p0 = pnand %p627_p12, %p626_p9  ;;  %p633_p6 = por %p632_p13, %p631_p1 }
  0x4c   : > { %p629_p4 = pneg %p628_p0  ;;  %p635_p2 = por %p634_p3, %p633_p6 }
  0x4e   : > { %p636_p8 = pnand %p635_p2, %p629_p4 }
  0x50   : > { %639 = shalt.err (!%p636_p8)
}
  0x51   : > { %s640_s20 = scalar_lea.vmem %s996_s9, 256  ;;  %s787_s24 = smov [#allocation5]  }
  0x52   : > { %p641_p9 = scmp.ne.s32.totalorder %s996_s9, %s640_s20  ;;  %s645_s25 = sshll.u32 %s787_s24, 4  ;;  %s646_s25 = int_to_ptr.vmem [resolvable:$false] %s645_s25 }
  0x53   : > { %s647_s28 = scalar_lea.vmem %s646_s25, 512  ;;  %p648_p7 = scmp.lt.s32.totalorder %s996_s9, %s646_s25 }
  0x54   : > { %p643_p0 = pnand %p641_p9, %p627_p12  ;;  %p649_p1 = scmp.lt.s32.totalorder %s647_s28, %s640_s20 }
  0x56   : > { %p644_p11 = pneg %p643_p0  ;;  %p650_p13 = por %p649_p1, %p648_p7 }
  0x58   : > { %p651_p6 = pnand %p650_p13, %p644_p11 }
  0x5a   : > { %654 = shalt.err (!%p651_p6)
}
  0x5b   : > { %s1153_s8 = smov 128   ;;  %178 = sbr.rel (%p960_p10) target bundleno = 343 (0x157), region = 28 }
  0x5c   : > { %494 = dma.hbm_to_vmem [thread:$0]  (!%p1000_p5), %s994_s21, 256, %s996_s9, %s1004_s6, %s1153_s8, %s1153_s8, %s786_s26  }
  0x5d   : > { %s1038_s29 = sand.u32 (!%p960_p10), 1, %s757_s13   ;;  %p1154_p8 = scmp.ne.s32.totalorder (!%p960_p10), %s1148_s7, 0 }
  0x5e   : > { %s445_s22 = sshll.u32 (!%p960_p10), %s1038_s29, 5  ;;  %s181_s20 = scalar_lea.sflag (!%p960_p10), [#allocation3], %s1038_s29 }
  0x5f   : > { %s184_s24 = scalar_lea.vmem (!%p960_p10), [#allocation2], %s445_s22 }
  0x62   : > { %728 = dma.done.wait (%p1154_p8), %s181_s20, 512  }
  0x63   : > { %730 = vsyncadd (%p1154_p8), %s181_s20, 4294966784  ;;  %s189_s26 = sand.u32 1, %s745_s10   ;;  %p1155_p10 = scmp.ne.s32.totalorder %s1150_s23, 0 }
  0x64   : > { %s446_s21 = sshll.u32 %s189_s26, 4  ;;  %s190_s30 = scalar_lea.sflag [#allocation6], %s189_s26 }
  0x65   : > { %s193_s9 = scalar_lea.vmem [#allocation5], %s446_s21 }
  0x66   : > { %732 = dma.done.wait (%p1155_p10), %s190_s30, 256  }
  0x67   : > { %734 = vsyncadd (%p1155_p10), %s190_s30, 4294967040  ;;  %vm225_vm0 = vcmask 261120   ;;  %v221_v0 = vld [vmem:[%s184_s24] sm:$0xff]  ;;  %v222_v1 = vld [vmem:[%s184_s24 + $0x8] sm:$0xff]  ;;  %s447_s7 = sshll.u32 %s1038_s29, 4  ;;  %s481_s23 = smul.u32 6, %s769_s16 }
  0x68   : > { %v223_v2 = vld [vmem:[%s184_s24 + $0x10] sm:$0xff]  ;;  %v472_v3 = vpack.c.bf16 %v222_v1, %v221_v0  ;;  %v224_v4 = vld [vmem:[%s184_s24 + $0x18] sm:$0xff]  ;;  %s218_s6 = scalar_lea.vmem [#allocation7], %s447_s7  ;;  %s310_s24 = scalar_lea.sflag [#allocation4], %s1038_s29 }
  0x69   : > { %v219_v5 = vld [vmem:[%s193_s9] sm:$0xff]  ;;  %v476_v6 = vpack.c.bf16 %v224_v4, %v223_v2  ;;  %v220_v7 = vld [vmem:[%s193_s9 + $0x8] sm:$0xff]  ;;  %s321_s4 = sadd.s32 %s765_s15, %s481_s23  ;;  %s324_s25 = sshll.u32 %s218_s6, 4  ;;  %s1054_s25 = int_to_ptr.vmem [resolvable:$true] %s324_s25 }
  0x6a   : > { %469 = vmatprep.mubr.msk.f32.mxu0 %vm225_vm0, %v219_v5  ;;  %473 = vmatprep.subr.bf16.mxu0 %v472_v3  ;;  %s451_s28 = sshll.u32 %s321_s4, 7  ;;  %s655_s16 = scalar_lea.vmem %s1054_s25, 256 }
  0x6b   : > { %475 = vmatpush3.bf16.msra.mxu0 %v472_v3  ;;  %s1059_s20 = scalar_lea.hbm %s1124_s2, %s451_s28  ;;  %p656_p7 = scmp.ne.s32.totalorder %s1054_s25, %s655_s16 }
  0x6c   : > { %477 = vmatprep.subr.bf16.mxu0 %v476_v6  ;;  %p1156_p11 = scmp.ne.s32.totalorder %s1139_s27, 0  ;;  %s788_s15 = smov [#allocation7]  }
  0x6d   : > { %s659_s26 = sshll.u32 %s788_s15, 4  ;;  %s660_s26 = int_to_ptr.vmem [resolvable:$false] %s659_s26 }
  0x6e   : > { %p657_p5 = pnand %p656_p7, %p1156_p11  ;;  %s661_s21 = scalar_lea.vmem %s660_s26, 512 }
  0x6f   : > { %479 = vmatpush3.bf16.msra.mxu0 %v476_v6  ;;  %p662_p4 = scmp.lt.s32.totalorder %s1054_s25, %s660_s26  ;;  %p663_p3 = scmp.lt.s32.totalorder %s661_s21, %s655_s16 }
  0x70   : > { %p658_p12 = pneg %p657_p5 }
  0x71   : > { %p664_p2 = por %p663_p3, %p662_p4 }
  0x72   : > { %470 = vmatmul.mubr.msk.f32.vlgmr.msra.gmra.mrb[0].mxu0 %vm225_vm0, %v220_v7 }
  0x73   : > { %p665_p9 = pnand %p664_p2, %p658_p12 }
 0x145   : > { %v471_v8 = vpop.f32.mrb[0].mxu0 }
 0x146   : > { %308 = vst [vmem:[%s218_s6 + $0x8] sm:$0xff] %v471_v8  ;;  %v298_v9 = vpop.f32.mrb[1].mxu0 }
 0x147   : > { %307 = vst [vmem:[%s218_s6] sm:$0xff] %v298_v9 }
 0x148   : > { %668 = shalt.err (!%p665_p9)
}
 0x149   : > { %s669_s30 = scalar_lea.hbm %s1059_s20, 256  ;;  %s673_s23 = scalar_lea.hbm %s1124_s2, 1536 }
 0x14a   : > { %p670_p0 = scmp.ne.s32.totalorder %s1059_s20, %s669_s30  ;;  %p674_p6 = scmp.lt.u32.totalorder %s1059_s20, %s1124_s2 }
 0x14b   : > { %p675_p8 = scmp.lt.u32.totalorder %s673_s23, %s669_s30  ;;  %p677_p7 = scmp.lt.u32.totalorder %s669_s30, %s1059_s20 }
 0x14c   : > { %p671_p1 = pnand %p670_p0, %p1156_p11 }
 0x14d   : > { %p676_p10 = por %p675_p8, %p674_p6 }
 0x14e   : > { %p672_p13 = pneg %p671_p1 }
 0x14f   : > { %p678_p5 = por %p677_p7, %p676_p10 }
 0x151   : > { %p679_p12 = pnand %p678_p5, %p672_p13 }
 0x153   : > { %682 = shalt.err (!%p679_p12)
}
 0x154   : > { %s789_s28 = smov 128   ;;  %s790_s8 = smov 384  }
 0x155   : > { %s791_s22 = smov 8  }
 0x156   : > { %486 = dma.vmem_to_hbm [thread:$0]  (%p1156_p11), %s1054_s25, 256, %s1059_s20, %s310_s24, %s789_s28, %s790_s8, %s791_s22  }
 0x157 PF: > { %s1157_s16 = sld [smem:[#allocation13_spill]]  ;;  %p500_p4 = scmp.ge.s32.totalorder %s781_s19, 2 }
 0x158   : > { %s339_s15 = sand.u32 1, %s753_s12  }
 0x159   : > { %s340_s26 = scalar_lea.sflag [#allocation4], %s339_s15 }
 0x15d   : > { %p1158_p3 = scmp.ne.s32.totalorder %s1157_s16, 0 }
 0x15f   : > { %p496_p2 = pnand %p500_p4, %p1158_p3 }
 0x161   : > { %736 = dma.done.wait (!%p496_p2), %s340_s26, 256  }
 0x162   : > { %738 = vsyncadd (!%p496_p2), %s340_s26, 4294967040  ;;  %s21_s19 = sadd.s32 1, %s781_s19   ;;  %s1159_s27 = sld [smem:[#allocation11_spill]] }
 0x163   : > { %p18_p9 = scmp.ge.s32.totalorder %s21_s19, 8   ;;  %s1160_s29 = sld [smem:[#allocation12_spill]] }
 0x164   : > { %s1161_s9 = smov %s745_s10  ;;  %s1162_s10 = smov %s749_s11 }
 0x165   : > { %s1163_s11 = smov %s970_s3  ;;  %s1164_s12 = smov %s757_s13 }
 0x166   : > { %s1165_s13 = smov %s761_s14  ;;  %s1166_s14 = smov %s908_s5 }
 0x167   : > { %s1167_s15 = smov %s773_s17  ;;  %s1168_s16 = smov %s777_s18 }
 0x168   : > { %s1169_s17 = smov %s1159_s27  ;;  %20 = sbr.rel (!%p18_p9) target bundleno = 11 (0xb), region = 86 }
 0x169   : > { %s1170_s18 = smov %s1160_s29 }
 0x16f   :  { %345 = vsyncpa [#allocation3], 1 }
 0x170   :  { %347 = vsyncpa [#allocation3 + $0x1], 1 }
 0x171   :  { %348 = vsyncpa [#allocation6], 1 }
 0x172   :  { %350 = vsyncpa [#allocation6 + $0x1], 1 }
 0x173   :  { %351 = vsyncpa [#allocation4], 1 }
 0x174   :  { %353 = vsyncpa [#allocation4 + $0x1], 1 }

</bundles_post_ra>
